<compile_context>
chip_gen: v5e
topology: v5e:2x2
jax: 0.10.0
libtpu: 0.0.40
codegen_flags: <defaults>
</compile_context>

<pallas_src>
import functools
import math

import jax
import jax.numpy as jnp
from jax.experimental import pallas as pl
from jax.experimental.pallas import tpu as pltpu


_LANES = 128
_TARGET_BLOCK_ROWS = 2048        # (2048, 128) f32 block = 1 MiB per pipeline buffer

# ---- stateless counter-based Gaussian (int32 VPU ops only) -------------------

_M1 = 0x7FEB352D                 # "lowbias32" finalizer constants
_M2 = 0x846CA68B
_GOLDEN = 0x9E3779B9
_N_WORDS = 3                                     # 3 x 32 bits = 12 uniform bytes / element
_IH_MEAN = 127.5 * 4 * _N_WORDS                  # mean of the 12-byte sum  (= 1530)
_IH_INV_STD = 1.0 / math.sqrt(_N_WORDS * 4 * (256.0 ** 2 - 1.0) / 12.0)


def _i32(v):
    """Python int -> wrapping int32 constant (handles constants >= 2**31)."""
    v &= 0xFFFFFFFF
    return jnp.int32(v - (1 << 32) if v >= (1 << 31) else v)


def _srl(x, n):
    """Logical right shift for int32 (arithmetic shift + mask)."""
    return (x >> n) & jnp.int32((1 << (32 - n)) - 1)


def _lowbias32(x):
    """Integer avalanche hash (good for counter inputs); int32 in, int32 out."""
    x = x ^ _srl(x, 16)
    x = x * _i32(_M1)
    x = x ^ _srl(x, 15)
    x = x * _i32(_M2)
    x = x ^ _srl(x, 16)
    return x


def _sum4bytes(w):
    """Sum of the 4 unsigned bytes of an int32 word, in [0, 1020] (integer domain)."""
    m = jnp.int32(0x00FF00FF)
    t = (w & m) + ((w >> 8) & m)                 # two 16-bit partial sums
    return (t & jnp.int32(0xFFFF)) + (t >> 16)


def _counter_gaussian(idx, seed):
    """~N(0,1) per element: hash (global index, seed) -> 12 uniform bytes -> Irwin-Hall."""
    sh = _lowbias32(seed * _i32(_GOLDEN))        # scalar seed mix (scalar-unit ops)
    idx3 = idx * _N_WORDS
    acc = None
    for k in range(_N_WORDS):
        w = _lowbias32((idx3 + k) ^ sh)
        b = _sum4bytes(w)
        acc = b if acc is None else acc + b
    return (acc.astype(jnp.float32) - jnp.float32(_IH_MEAN)) * jnp.float32(_IH_INV_STD)


# ---- kernel ------------------------------------------------------------------

def _add_gaussian_noise_kernel(seed_ref, x_ref, o_ref, *, std):
    tr, lanes = x_ref.shape
    pid = pl.program_id(0)
    row = jax.lax.broadcasted_iota(jnp.int32, (tr, lanes), 0)
    col = jax.lax.broadcasted_iota(jnp.int32, (tr, lanes), 1)
    idx = (pid * tr + row) * lanes + col          # global flat element index (tile-unique)
    z = _counter_gaussian(idx, seed_ref[0])
    y = x_ref[...].astype(jnp.float32) + z * jnp.float32(std)
    o_ref[...] = jnp.clip(y, 0.0, 1.0).astype(o_ref.dtype)


# ---- wrapper -----------------------------------------------------------------

def _ceil_div(a, b):
    return -(-a // b)


def _round_up(a, b):
    return _ceil_div(a, b) * b


@functools.partial(jax.jit, static_argnames=("std", "block_rows"))
def _add_gaussian_noise_impl(x, seed, *, std, block_rows):
    orig_shape, dtype = x.shape, x.dtype
    total = x.size

    # Sublane multiple for the block's second-to-last dim: 8 (f32), 16 (bf16), 32 (i8).
    sub = 8 * max(1, 4 // dtype.itemsize)
    rows = _ceil_div(total, _LANES)
    num_tiles = max(1, _ceil_div(rows, block_rows))
    tr = _round_up(_ceil_div(rows, num_tiles), sub)   # <= block_rows, minimal padding
    padded_rows = tr * num_tiles
    padded_total = padded_rows * _LANES

    flat = x.reshape(total)
    if padded_total != total:
        flat = jnp.pad(flat, (0, padded_total - total))
    x2 = flat.reshape(padded_rows, _LANES)            # lane-dense 2D slab
    seed_arr = jnp.asarray(seed, jnp.int32).reshape(1)

    out2 = pl.pallas_call(
        functools.partial(_add_gaussian_noise_kernel, std=std),
        out_shape=jax.ShapeDtypeStruct((padded_rows, _LANES), dtype),
        grid_spec=pltpu.PrefetchScalarGridSpec(
            num_scalar_prefetch=1,                    # seed lands in SMEM
            grid=(num_tiles,),
            in_specs=[pl.BlockSpec((tr, _LANES), lambda i, seed: (i, 0))],
            out_specs=pl.BlockSpec((tr, _LANES), lambda i, seed: (i, 0)),
        ),
        compiler_params=pltpu.CompilerParams(
            dimension_semantics=("parallel",)),       # lets v7x shard tiles over 2 TCs
    )(seed_arr, x2)

    out_flat = out2.reshape(padded_total)
    if padded_total != total:
        out_flat = out_flat[:total]
    return out_flat.reshape(orig_shape)


def add_gaussian_noise(x, seed, std=1.0, block_rows=_TARGET_BLOCK_ROWS):
    """clip(x + N(0,1)*std, 0, 1) with on-chip noise sampling."""
    return _add_gaussian_noise_impl(x, seed, std=float(std), block_rows=int(block_rows))


# ---- pure-JAX reference of the same sampler (for verification) ---------------

def _reference(x, seed, std=1.0):
    idx = jnp.arange(x.size, dtype=jnp.int32).reshape(x.shape)
    z = _counter_gaussian(idx, jnp.int32(seed))
    y = x.astype(jnp.float32) + z * jnp.float32(std)
    return jnp.clip(y, 0.0, 1.0).astype(x.dtype)


if __name__ == "__main__":
    key = jax.random.PRNGKey(0)
    # NCHW, small shape consistent with an image-augmentation module.
    x = jax.random.uniform(key, (2, 4, 16, 16), dtype=jnp.float32)

    y = jax.block_until_ready(add_gaussian_noise(x, seed=0, std=1.0))
    assert y.shape == x.shape and y.dtype == x.dtype
    assert float(jnp.min(y)) >= 0.0 and float(jnp.max(y)) <= 1.0

    # Kernel matches the pure-JAX reference of the same sampler.
    y_ref = _reference(x, seed=0, std=1.0)
    assert bool(jnp.allclose(y, y_ref, rtol=0.0, atol=1e-5))

    # Grid-invariance: forcing a multi-tile grid (block_rows=8 -> 2 tiles) gives an
    # identical result, proving per-tile indexing/seeding is correct.
    y_tiled = jax.block_until_ready(add_gaussian_noise(x, seed=0, std=1.0, block_rows=8))
    assert bool(jnp.array_equal(y, y_tiled))

    # Noise is actually applied, and different seeds decorrelate.
    assert bool(jnp.any(jnp.abs(y - jnp.clip(x, 0.0, 1.0)) > 1e-3))
    y_s1 = jax.block_until_ready(add_gaussian_noise(x, seed=1, std=1.0))
    assert not bool(jnp.array_equal(y, y_s1))

    print("KERNEL_OK")
</pallas_src>

<mosaic_0001>
module attributes {stable_mosaic.version = 11 : i64} {
  func.func @_add_gaussian_noise_kernel(%arg0: i32, %arg1: memref<1xi32, #tpu.memory_space<smem>>, %arg2: memref<16x128xf32, #tpu.memory_space<vmem>>, %arg3: memref<16x128xf32, #tpu.memory_space<vmem>>) attributes {dimension_semantics = [#tpu.dimension_semantics<parallel>], iteration_bounds = array<i64: 1>, scalar_prefetch = 1 : i64, scratch_operands = 0 : i64, tpu.core_type = #tpu.core_type<tc>, window_params = [{transform_indices = @transform_0, window_bounds = array<i64: 16, 128>}, {transform_indices = @transform_1, window_bounds = array<i64: 16, 128>}]} {
    %0 = tpu.iota {dimensions = array<i32: 0>} : vector<16x128xi32>
    %1 = tpu.iota {dimensions = array<i32: 1>} : vector<16x128xi32>
    %c16_i32 = arith.constant 16 : i32
    %2 = arith.muli %arg0, %c16_i32 : i32
    %3 = vector.broadcast %2 : i32 to vector<16x128xi32>
    %4 = arith.addi %3, %0 : vector<16x128xi32>
    %c128_i32 = arith.constant 128 : i32
    %5 = vector.broadcast %c128_i32 : i32 to vector<16x128xi32>
    %6 = arith.muli %4, %5 : vector<16x128xi32>
    %7 = arith.addi %6, %1 : vector<16x128xi32>
    %c0 = arith.constant 0 : index
    %8 = memref.load %arg1[%c0] : memref<1xi32, #tpu.memory_space<smem>>
    %c-1640531527_i32 = arith.constant -1640531527 : i32
    %9 = arith.muli %8, %c-1640531527_i32 : i32
    %c16_i32_0 = arith.constant 16 : i32
    %10 = arith.shrsi %9, %c16_i32_0 : i32
    %c65535_i32 = arith.constant 65535 : i32
    %11 = arith.andi %10, %c65535_i32 : i32
    %12 = arith.xori %9, %11 : i32
    %c2146121005_i32 = arith.constant 2146121005 : i32
    %13 = arith.muli %12, %c2146121005_i32 : i32
    %c15_i32 = arith.constant 15 : i32
    %14 = arith.shrsi %13, %c15_i32 : i32
    %c131071_i32 = arith.constant 131071 : i32
    %15 = arith.andi %14, %c131071_i32 : i32
    %16 = arith.xori %13, %15 : i32
    %c-2073254261_i32 = arith.constant -2073254261 : i32
    %17 = arith.muli %16, %c-2073254261_i32 : i32
    %c16_i32_1 = arith.constant 16 : i32
    %18 = arith.shrsi %17, %c16_i32_1 : i32
    %c65535_i32_2 = arith.constant 65535 : i32
    %19 = arith.andi %18, %c65535_i32_2 : i32
    %20 = arith.xori %17, %19 : i32
    %c3_i32 = arith.constant 3 : i32
    %21 = vector.broadcast %c3_i32 : i32 to vector<16x128xi32>
    %22 = arith.muli %7, %21 : vector<16x128xi32>
    %c0_i32 = arith.constant 0 : i32
    %23 = vector.broadcast %c0_i32 : i32 to vector<16x128xi32>
    %24 = arith.addi %22, %23 : vector<16x128xi32>
    %25 = vector.broadcast %20 : i32 to vector<16x128xi32>
    %26 = arith.xori %24, %25 : vector<16x128xi32>
    %c16_i32_3 = arith.constant 16 : i32
    %27 = vector.broadcast %c16_i32_3 : i32 to vector<16x128xi32>
    %28 = arith.shrsi %26, %27 : vector<16x128xi32>
    %c65535_i32_4 = arith.constant 65535 : i32
    %29 = vector.broadcast %c65535_i32_4 : i32 to vector<16x128xi32>
    %30 = arith.andi %28, %29 : vector<16x128xi32>
    %31 = arith.xori %26, %30 : vector<16x128xi32>
    %c2146121005_i32_5 = arith.constant 2146121005 : i32
    %32 = vector.broadcast %c2146121005_i32_5 : i32 to vector<16x128xi32>
    %33 = arith.muli %31, %32 : vector<16x128xi32>
    %c15_i32_6 = arith.constant 15 : i32
    %34 = vector.broadcast %c15_i32_6 : i32 to vector<16x128xi32>
    %35 = arith.shrsi %33, %34 : vector<16x128xi32>
    %c131071_i32_7 = arith.constant 131071 : i32
    %36 = vector.broadcast %c131071_i32_7 : i32 to vector<16x128xi32>
    %37 = arith.andi %35, %36 : vector<16x128xi32>
    %38 = arith.xori %33, %37 : vector<16x128xi32>
    %c-2073254261_i32_8 = arith.constant -2073254261 : i32
    %39 = vector.broadcast %c-2073254261_i32_8 : i32 to vector<16x128xi32>
    %40 = arith.muli %38, %39 : vector<16x128xi32>
    %c16_i32_9 = arith.constant 16 : i32
    %41 = vector.broadcast %c16_i32_9 : i32 to vector<16x128xi32>
    %42 = arith.shrsi %40, %41 : vector<16x128xi32>
    %c65535_i32_10 = arith.constant 65535 : i32
    %43 = vector.broadcast %c65535_i32_10 : i32 to vector<16x128xi32>
    %44 = arith.andi %42, %43 : vector<16x128xi32>
    %45 = arith.xori %40, %44 : vector<16x128xi32>
    %c16711935_i32 = arith.constant 16711935 : i32
    %46 = vector.broadcast %c16711935_i32 : i32 to vector<16x128xi32>
    %47 = arith.andi %45, %46 : vector<16x128xi32>
    %c8_i32 = arith.constant 8 : i32
    %48 = vector.broadcast %c8_i32 : i32 to vector<16x128xi32>
    %49 = arith.shrsi %45, %48 : vector<16x128xi32>
    %c16711935_i32_11 = arith.constant 16711935 : i32
    %50 = vector.broadcast %c16711935_i32_11 : i32 to vector<16x128xi32>
    %51 = arith.andi %49, %50 : vector<16x128xi32>
    %52 = arith.addi %47, %51 : vector<16x128xi32>
    %c65535_i32_12 = arith.constant 65535 : i32
    %53 = vector.broadcast %c65535_i32_12 : i32 to vector<16x128xi32>
    %54 = arith.andi %52, %53 : vector<16x128xi32>
    %c16_i32_13 = arith.constant 16 : i32
    %55 = vector.broadcast %c16_i32_13 : i32 to vector<16x128xi32>
    %56 = arith.shrsi %52, %55 : vector<16x128xi32>
    %57 = arith.addi %54, %56 : vector<16x128xi32>
    %c1_i32 = arith.constant 1 : i32
    %58 = vector.broadcast %c1_i32 : i32 to vector<16x128xi32>
    %59 = arith.addi %22, %58 : vector<16x128xi32>
    %60 = vector.broadcast %20 : i32 to vector<16x128xi32>
    %61 = arith.xori %59, %60 : vector<16x128xi32>
    %c16_i32_14 = arith.constant 16 : i32
    %62 = vector.broadcast %c16_i32_14 : i32 to vector<16x128xi32>
    %63 = arith.shrsi %61, %62 : vector<16x128xi32>
    %c65535_i32_15 = arith.constant 65535 : i32
    %64 = vector.broadcast %c65535_i32_15 : i32 to vector<16x128xi32>
    %65 = arith.andi %63, %64 : vector<16x128xi32>
    %66 = arith.xori %61, %65 : vector<16x128xi32>
    %c2146121005_i32_16 = arith.constant 2146121005 : i32
    %67 = vector.broadcast %c2146121005_i32_16 : i32 to vector<16x128xi32>
    %68 = arith.muli %66, %67 : vector<16x128xi32>
    %c15_i32_17 = arith.constant 15 : i32
    %69 = vector.broadcast %c15_i32_17 : i32 to vector<16x128xi32>
    %70 = arith.shrsi %68, %69 : vector<16x128xi32>
    %c131071_i32_18 = arith.constant 131071 : i32
    %71 = vector.broadcast %c131071_i32_18 : i32 to vector<16x128xi32>
    %72 = arith.andi %70, %71 : vector<16x128xi32>
    %73 = arith.xori %68, %72 : vector<16x128xi32>
    %c-2073254261_i32_19 = arith.constant -2073254261 : i32
    %74 = vector.broadcast %c-2073254261_i32_19 : i32 to vector<16x128xi32>
    %75 = arith.muli %73, %74 : vector<16x128xi32>
    %c16_i32_20 = arith.constant 16 : i32
    %76 = vector.broadcast %c16_i32_20 : i32 to vector<16x128xi32>
    %77 = arith.shrsi %75, %76 : vector<16x128xi32>
    %c65535_i32_21 = arith.constant 65535 : i32
    %78 = vector.broadcast %c65535_i32_21 : i32 to vector<16x128xi32>
    %79 = arith.andi %77, %78 : vector<16x128xi32>
    %80 = arith.xori %75, %79 : vector<16x128xi32>
    %c16711935_i32_22 = arith.constant 16711935 : i32
    %81 = vector.broadcast %c16711935_i32_22 : i32 to vector<16x128xi32>
    %82 = arith.andi %80, %81 : vector<16x128xi32>
    %c8_i32_23 = arith.constant 8 : i32
    %83 = vector.broadcast %c8_i32_23 : i32 to vector<16x128xi32>
    %84 = arith.shrsi %80, %83 : vector<16x128xi32>
    %c16711935_i32_24 = arith.constant 16711935 : i32
    %85 = vector.broadcast %c16711935_i32_24 : i32 to vector<16x128xi32>
    %86 = arith.andi %84, %85 : vector<16x128xi32>
    %87 = arith.addi %82, %86 : vector<16x128xi32>
    %c65535_i32_25 = arith.constant 65535 : i32
    %88 = vector.broadcast %c65535_i32_25 : i32 to vector<16x128xi32>
    %89 = arith.andi %87, %88 : vector<16x128xi32>
    %c16_i32_26 = arith.constant 16 : i32
    %90 = vector.broadcast %c16_i32_26 : i32 to vector<16x128xi32>
    %91 = arith.shrsi %87, %90 : vector<16x128xi32>
    %92 = arith.addi %89, %91 : vector<16x128xi32>
    %93 = arith.addi %57, %92 : vector<16x128xi32>
    %c2_i32 = arith.constant 2 : i32
    %94 = vector.broadcast %c2_i32 : i32 to vector<16x128xi32>
    %95 = arith.addi %22, %94 : vector<16x128xi32>
    %96 = vector.broadcast %20 : i32 to vector<16x128xi32>
    %97 = arith.xori %95, %96 : vector<16x128xi32>
    %c16_i32_27 = arith.constant 16 : i32
    %98 = vector.broadcast %c16_i32_27 : i32 to vector<16x128xi32>
    %99 = arith.shrsi %97, %98 : vector<16x128xi32>
    %c65535_i32_28 = arith.constant 65535 : i32
    %100 = vector.broadcast %c65535_i32_28 : i32 to vector<16x128xi32>
    %101 = arith.andi %99, %100 : vector<16x128xi32>
    %102 = arith.xori %97, %101 : vector<16x128xi32>
    %c2146121005_i32_29 = arith.constant 2146121005 : i32
    %103 = vector.broadcast %c2146121005_i32_29 : i32 to vector<16x128xi32>
    %104 = arith.muli %102, %103 : vector<16x128xi32>
    %c15_i32_30 = arith.constant 15 : i32
    %105 = vector.broadcast %c15_i32_30 : i32 to vector<16x128xi32>
    %106 = arith.shrsi %104, %105 : vector<16x128xi32>
    %c131071_i32_31 = arith.constant 131071 : i32
    %107 = vector.broadcast %c131071_i32_31 : i32 to vector<16x128xi32>
    %108 = arith.andi %106, %107 : vector<16x128xi32>
    %109 = arith.xori %104, %108 : vector<16x128xi32>
    %c-2073254261_i32_32 = arith.constant -2073254261 : i32
    %110 = vector.broadcast %c-2073254261_i32_32 : i32 to vector<16x128xi32>
    %111 = arith.muli %109, %110 : vector<16x128xi32>
    %c16_i32_33 = arith.constant 16 : i32
    %112 = vector.broadcast %c16_i32_33 : i32 to vector<16x128xi32>
    %113 = arith.shrsi %111, %112 : vector<16x128xi32>
    %c65535_i32_34 = arith.constant 65535 : i32
    %114 = vector.broadcast %c65535_i32_34 : i32 to vector<16x128xi32>
    %115 = arith.andi %113, %114 : vector<16x128xi32>
    %116 = arith.xori %111, %115 : vector<16x128xi32>
    %c16711935_i32_35 = arith.constant 16711935 : i32
    %117 = vector.broadcast %c16711935_i32_35 : i32 to vector<16x128xi32>
    %118 = arith.andi %116, %117 : vector<16x128xi32>
    %c8_i32_36 = arith.constant 8 : i32
    %119 = vector.broadcast %c8_i32_36 : i32 to vector<16x128xi32>
    %120 = arith.shrsi %116, %119 : vector<16x128xi32>
    %c16711935_i32_37 = arith.constant 16711935 : i32
    %121 = vector.broadcast %c16711935_i32_37 : i32 to vector<16x128xi32>
    %122 = arith.andi %120, %121 : vector<16x128xi32>
    %123 = arith.addi %118, %122 : vector<16x128xi32>
    %c65535_i32_38 = arith.constant 65535 : i32
    %124 = vector.broadcast %c65535_i32_38 : i32 to vector<16x128xi32>
    %125 = arith.andi %123, %124 : vector<16x128xi32>
    %c16_i32_39 = arith.constant 16 : i32
    %126 = vector.broadcast %c16_i32_39 : i32 to vector<16x128xi32>
    %127 = arith.shrsi %123, %126 : vector<16x128xi32>
    %128 = arith.addi %125, %127 : vector<16x128xi32>
    %129 = arith.addi %93, %128 : vector<16x128xi32>
    %130 = arith.sitofp %129 : vector<16x128xi32> to vector<16x128xf32>
    %cst = arith.constant 1.530000e+03 : f32
    %131 = vector.broadcast %cst : f32 to vector<16x128xf32>
    %132 = arith.subf %130, %131 : vector<16x128xf32>
    %cst_40 = arith.constant 3.906280e-03 : f32
    %133 = vector.broadcast %cst_40 : f32 to vector<16x128xf32>
    %134 = arith.mulf %132, %133 : vector<16x128xf32>
    %c0_41 = arith.constant 0 : index
    %c0_42 = arith.constant 0 : index
    %135 = vector.load %arg2[%c0_41, %c0_42] : memref<16x128xf32, #tpu.memory_space<vmem>>, vector<16x128xf32>
    %cst_43 = arith.constant 1.000000e+00 : f32
    %136 = vector.broadcast %cst_43 : f32 to vector<16x128xf32>
    %137 = arith.mulf %134, %136 : vector<16x128xf32>
    %138 = arith.addf %135, %137 : vector<16x128xf32>
    %cst_44 = arith.constant 0.000000e+00 : f32
    %cst_45 = arith.constant 1.000000e+00 : f32
    %139 = vector.broadcast %cst_44 : f32 to vector<16x128xf32>
    %140 = arith.maximumf %139, %138 : vector<16x128xf32>
    %141 = vector.broadcast %cst_45 : f32 to vector<16x128xf32>
    %142 = arith.minimumf %141, %140 : vector<16x128xf32>
    %c0_46 = arith.constant 0 : index
    %c0_47 = arith.constant 0 : index
    %143 = vector.load %arg3[%c0_46, %c0_47] : memref<16x128xf32, #tpu.memory_space<vmem>>, vector<16x128xf32>
    tpu.vector_store %arg3[%c0_46, %c0_47], %142 {strides = array<i32>} : memref<16x128xf32, #tpu.memory_space<vmem>>, vector<16x128xf32>,
    return
  }
  func.func @transform_0(%arg0: i32, %arg1: memref<1xi32, #tpu.memory_space<smem>>) -> (i32, i32) {
    %c0_i32 = arith.constant 0 : i32
    %c0_i32_0 = arith.constant 0 : i32
    return %arg0, %c0_i32 : i32, i32
  }
  func.func @transform_1(%arg0: i32, %arg1: memref<1xi32, #tpu.memory_space<smem>>) -> (i32, i32) {
    %c0_i32 = arith.constant 0 : i32
    %c0_i32_0 = arith.constant 0 : i32
    return %arg0, %c0_i32 : i32, i32
  }
}

</mosaic_0001>

<bundles_post_ra>
// kernel: _add_gaussian_noise_impl.1
= control target key start
LH: loop header
LB: loop body
LE: loop exit
PB: predicated region body
PF: predicated region fallthrough
CT: control target
= control target key end

     0   :  { %v10_v0 = vlaneseq  ;;  %s231_s0 = inlined_call_operand.<no memory space> [shape: s32[1], index: 0, kind: input, shape index: {}]   ;;  %s232_s1 = inlined_call_operand.vmem [shape: f32[16,128], index: 1, kind: input, shape index: {}]   ;;  %s233_s2 = inlined_call_operand.vmem [shape: f32[16,128], index: 2, kind: output, shape index: {}]  }
   0x1   :  { %s24_s11 = smul.u32 2654435769, %s231_s0 }
   0x2   :  { %v11_v1 = vshrl.u32 %v10_v0, 7  ;;  %v14_v2 = vand.u32 127, %v10_v0 }
   0x3   :  { %s25_s12 = sshra.s32 %s24_s11, 16 }
   0x4   :  { %v12_v3 = vadd.s32 8, %v11_v1  ;;  %v19_v4 = vmul.u32 128, %v11_v1  ;;  %s26_s13 = sand.u32 65535, %s25_s12 }
   0x5   :  { %s27_s14 = sxor.u32 %s26_s13, %s24_s11 }
   0x6   :  { %v20_v5 = vmul.u32 128, %v12_v3  ;;  %v21_v6 = vadd.s32 %v19_v4, %v14_v2  ;;  %s28_s15 = smul.u32 2146121005, %s27_s14 }
   0x8   :  { %v22_v7 = vadd.s32 %v20_v5, %v14_v2  ;;  %s29_s16 = sshra.s32 %s28_s15, 15  ;;  %v36_v8 = vmul.u32 3, %v21_v6 }
   0x9   :  { %s30_s17 = sand.u32 131071, %s29_s16 }
   0xa   :  { %s31_s18 = sxor.u32 %s30_s17, %s28_s15  ;;  %v37_v9 = vmul.u32 3, %v22_v7  ;;  %v77_v10 = vadd.s32 1, %v36_v8  ;;  %v119_v12 = vadd.s32 2, %v36_v8 }
   0xb   :  { %s32_s19 = smul.u32 2221713035, %s31_s18 }
   0xc   :  { %v78_v11 = vadd.s32 1, %v37_v9  ;;  %v120_v13 = vadd.s32 2, %v37_v9 }
   0xd   :  { %s33_s20 = sshra.s32 %s32_s19, 16 }
   0xe   :  { %s34_s0 = sand.u32 65535, %s33_s20 }
   0xf   :  { %s35_s21 = sxor.u32 %s34_s0, %s32_s19 }
  0x10   :  { %v38_v14 = vstv %s35_s21 }
  0x11   :  { %v39_v15 = vxor.u32 %v38_v14, %v36_v8  ;;  %v40_v16 = vxor.u32 %v38_v14, %v37_v9  ;;  %v79_v17 = vxor.u32 %v77_v10, %v38_v14  ;;  %v80_v18 = vxor.u32 %v78_v11, %v38_v14 }
  0x12   :  { %v121_v19 = vxor.u32 %v119_v12, %v38_v14  ;;  %v122_v20 = vxor.u32 %v120_v13, %v38_v14 }
  0x13   :  { %v181_v21 = vshrl.u32 %v39_v15, 16  ;;  %v182_v22 = vshrl.u32 %v40_v16, 16  ;;  %v187_v23 = vshrl.u32 %v79_v17, 16  ;;  %v188_v24 = vshrl.u32 %v80_v18, 16 }
  0x14   :  { %v193_v25 = vshrl.u32 %v121_v19, 16  ;;  %v194_v26 = vshrl.u32 %v122_v20, 16 }
  0x15   :  { %v45_v27 = vxor.u32 %v181_v21, %v39_v15  ;;  %v46_v28 = vxor.u32 %v182_v22, %v40_v16  ;;  %v85_v29 = vxor.u32 %v187_v23, %v79_v17  ;;  %v86_v30 = vxor.u32 %v188_v24, %v80_v18 }
  0x16   :  { %v127_v31 = vxor.u32 %v193_v25, %v121_v19  ;;  %v128_v32 = vxor.u32 %v194_v26, %v122_v20 }
  0x17   :  { %v47_v33 = vmul.u32 2146121005, %v45_v27  ;;  %v48_v34 = vmul.u32 2146121005, %v46_v28  ;;  %v87_v35 = vmul.u32 2146121005, %v85_v29 }
  0x18   :  { %v88_v36 = vmul.u32 2146121005, %v86_v30  ;;  %v129_v37 = vmul.u32 2146121005, %v127_v31  ;;  %v130_v38 = vmul.u32 2146121005, %v128_v32 }
  0x19   :  { %v183_v39 = vshrl.u32 %v47_v33, 15  ;;  %v184_v40 = vshrl.u32 %v48_v34, 15  ;;  %v189_v41 = vshrl.u32 %v87_v35, 15 }
  0x1a   :  { %v190_v42 = vshrl.u32 %v88_v36, 15  ;;  %v195_v43 = vshrl.u32 %v129_v37, 15  ;;  %v196_v44 = vshrl.u32 %v130_v38, 15 }
  0x1b   :  { %v53_v45 = vxor.u32 %v183_v39, %v47_v33  ;;  %v54_v46 = vxor.u32 %v184_v40, %v48_v34  ;;  %v93_v47 = vxor.u32 %v189_v41, %v87_v35 }
  0x1c   :  { %v94_v48 = vxor.u32 %v190_v42, %v88_v36  ;;  %v135_v49 = vxor.u32 %v195_v43, %v129_v37  ;;  %v136_v50 = vxor.u32 %v196_v44, %v130_v38 }
  0x1d   :  { %v55_v51 = vmul.u32 2221713035, %v53_v45  ;;  %v56_v52 = vmul.u32 2221713035, %v54_v46  ;;  %v95_v53 = vmul.u32 2221713035, %v93_v47 }
  0x1e   :  { %v96_v54 = vmul.u32 2221713035, %v94_v48  ;;  %v137_v55 = vmul.u32 2221713035, %v135_v49  ;;  %v138_v56 = vmul.u32 2221713035, %v136_v50 }
  0x1f   :  { %v185_v57 = vshrl.u32 %v55_v51, 16  ;;  %v186_v58 = vshrl.u32 %v56_v52, 16  ;;  %v191_v59 = vshrl.u32 %v95_v53, 16 }
  0x20   :  { %v192_v60 = vshrl.u32 %v96_v54, 16  ;;  %v197_v61 = vshrl.u32 %v137_v55, 16  ;;  %v198_v62 = vshrl.u32 %v138_v56, 16 }
  0x21   :  { %v61_v63 = vxor.u32 %v185_v57, %v55_v51  ;;  %v62_v0 = vxor.u32 %v186_v58, %v56_v52  ;;  %v101_v1 = vxor.u32 %v191_v59, %v95_v53 }
  0x22   :  { %v102_v2 = vxor.u32 %v192_v60, %v96_v54  ;;  %v143_v3 = vxor.u32 %v197_v61, %v137_v55  ;;  %v144_v4 = vxor.u32 %v198_v62, %v138_v56  ;;  %v167_v55 = vld [vmem:[%s232_s1] sm:$0xff]  ;;  %v168_v56 = vld [vmem:[%s232_s1 + $0x8] sm:$0xff] }
  0x23   :  { %v63_v5 = vand.u32 16711935, %v61_v63  ;;  %v64_v6 = vand.u32 16711935, %v62_v0  ;;  %v65_v7 = vshra.s32 %v61_v63, 8  ;;  %v66_v8 = vshra.s32 %v62_v0, 8 }
  0x24   :  { %v103_v9 = vand.u32 16711935, %v101_v1  ;;  %v104_v10 = vand.u32 16711935, %v102_v2  ;;  %v105_v11 = vshra.s32 %v101_v1, 8  ;;  %v106_v12 = vshra.s32 %v102_v2, 8 }
  0x25   :  { %v67_v13 = vand.u32 16711935, %v65_v7  ;;  %v68_v14 = vand.u32 16711935, %v66_v8  ;;  %v147_v19 = vshra.s32 %v143_v3, 8  ;;  %v148_v20 = vshra.s32 %v144_v4, 8 }
  0x26   :  { %v107_v15 = vand.u32 16711935, %v105_v11  ;;  %v108_v16 = vand.u32 16711935, %v106_v12  ;;  %v145_v23 = vand.u32 16711935, %v143_v3 }
  0x27   :  { %v69_v17 = vadd.s32 %v67_v13, %v63_v5  ;;  %v70_v18 = vadd.s32 %v68_v14, %v64_v6  ;;  %v146_v24 = vand.u32 16711935, %v144_v4  ;;  %v149_v35 = vand.u32 16711935, %v147_v19 }
  0x28   :  { %v109_v21 = vadd.s32 %v107_v15, %v103_v9  ;;  %v110_v22 = vadd.s32 %v108_v16, %v104_v10  ;;  %v150_v36 = vand.u32 16711935, %v148_v20 }
  0x29   :  { %v71_v25 = vand.u32 65535, %v69_v17  ;;  %v72_v26 = vand.u32 65535, %v70_v18  ;;  %v73_v27 = vshra.s32 %v69_v17, 16  ;;  %v74_v28 = vshra.s32 %v70_v18, 16 }
  0x2a   :  { %v111_v29 = vand.u32 65535, %v109_v21  ;;  %v112_v30 = vand.u32 65535, %v110_v22  ;;  %v113_v31 = vshra.s32 %v109_v21, 16  ;;  %v114_v32 = vshra.s32 %v110_v22, 16 }
  0x2b   :  { %v75_v33 = vadd.s32 %v73_v27, %v71_v25  ;;  %v76_v34 = vadd.s32 %v74_v28, %v72_v26  ;;  %v151_v39 = vadd.s32 %v149_v35, %v145_v23  ;;  %v152_v40 = vadd.s32 %v150_v36, %v146_v24 }
  0x2c   :  { %v115_v37 = vadd.s32 %v113_v31, %v111_v29  ;;  %v116_v38 = vadd.s32 %v114_v32, %v112_v30 }
  0x2d   :  { %v153_v43 = vand.u32 65535, %v151_v39  ;;  %v154_v44 = vand.u32 65535, %v152_v40  ;;  %v155_v45 = vshra.s32 %v151_v39, 16  ;;  %v156_v46 = vshra.s32 %v152_v40, 16 }
  0x2e   :  { %v117_v41 = vadd.s32 %v115_v37, %v75_v33  ;;  %v118_v42 = vadd.s32 %v116_v38, %v76_v34 }
  0x2f   :  { %v157_v47 = vadd.s32 %v155_v45, %v153_v43  ;;  %v158_v48 = vadd.s32 %v156_v46, %v154_v44 }
  0x31   :  { %v159_v49 = vadd.s32 %v157_v47, %v117_v41  ;;  %v160_v50 = vadd.s32 %v158_v48, %v118_v42 }
  0x33   :  { %v161_v51 = vcvt.s32.f32 %v159_v49  ;;  %v162_v52 = vcvt.s32.f32 %v160_v50 }
  0x35   :  { %v199_v53 = vadd.f32 -1530.0, %v161_v51  ;;  %v200_v54 = vadd.f32 -1530.0, %v162_v52 }
  0x37   :  { %v165_v57 = vmul.f32 0.00390628, %v199_v53  ;;  %v166_v58 = vmul.f32 0.00390628, %v200_v54 }
  0x39   :  { %v169_v59 = vadd.f32 %v167_v55, %v165_v57  ;;  %v170_v60 = vadd.f32 %v168_v56, %v166_v58 }
  0x3b   :  { %v171_v61 = vmax.f32 %v169_v59, 0.0  ;;  %v172_v62 = vmax.f32 %v170_v60, 0.0 }
  0x3d   :  { %v173_v63 = vmin.f32 %v171_v61, 1.0  ;;  %v174_v0 = vmin.f32 %v172_v62, 1.0 }
  0x3f   :  { %175 = vst [vmem:[%s233_s2] sm:$0xff] %v173_v63 }
  0x40   :  { %176 = vst [vmem:[%s233_s2 + $0x8] sm:$0xff] %v174_v0 }

</bundles_post_ra>
